<compile_context>
chip_gen: v6e
topology: v6e:2x2x1
jax: 0.10.0
libtpu: 0.0.40
codegen_flags: <defaults>
</compile_context>

<pallas_src>
import functools

import jax
import jax.numpy as jnp
from jax.experimental import pallas as pl
from jax.experimental.pallas import tpu as pltpu

LANE = 128      # padded feature width (one lane tile)
SUB = 8         # sublane multiple for batch tiles
MAX_TM = 512    # max rows per grid step (sweet spot per measured tile sweep)


def _mlp_kernel(x_ref, w_ref, b_ref, o_ref, *, in_features, out_features):
    """Fused 4-layer MLP on one batch tile.

    x_ref: (tm, in_features) f32        -- unpadded input columns
    w_ref: (4, LANE, LANE) f32          -- stacked, pre-transposed, zero-padded
    b_ref: (4, 1, LANE) f32             -- stacked, zero-padded biases
    o_ref: (tm, out_features) f32       -- narrow output writeback
    """
    x = x_ref[...]                                  # (tm, in_features)
    w1 = w_ref[0]                                   # (LANE, LANE)

    # Layer 1: K = in_features (e.g. 2) contraction as broadcast FMAs on the
    # VPU -- avoids padding x to 128 lanes and a near-empty MXU pass.
    h = x[:, 0:1] * w1[0:1, :]                      # (tm, LANE)
    for k in range(1, in_features):                 # static, tiny loop
        h = h + x[:, k:k + 1] * w1[k:k + 1, :]
    h = jnp.maximum(h + b_ref[0], 0.0)

    # Layers 2 & 3: 128x128 MXU matmuls (zero padding is inert).
    h = jnp.maximum(
        jnp.dot(h, w_ref[1], preferred_element_type=jnp.float32) + b_ref[1], 0.0)
    h = jnp.maximum(
        jnp.dot(h, w_ref[2], preferred_element_type=jnp.float32) + b_ref[2], 0.0)

    # Layer 4 + narrow store of only the real output columns.
    y = jnp.dot(h, w_ref[3], preferred_element_type=jnp.float32) + b_ref[3]
    o_ref[...] = y[:, :out_features].astype(o_ref.dtype)


def _round_up(n, m):
    return -(-n // m) * m


def _choose_tile(batch):
    """Rows per grid step: large tiles to amortize per-step overhead, but keep
    >= 2 grid steps for mid/large batches so v7x's two TensorCores both work."""
    b8 = _round_up(batch, SUB)
    if b8 <= 2 * SUB:
        return b8                          # tiny batch: single step
    if b8 <= 2 * MAX_TM:
        return _round_up(b8 // 2, SUB)     # exactly 2 parallel steps
    return MAX_TM                          # >=2 steps of 512 rows


def preprocess_params(params):
    """One-time prep (outside the per-call path): transpose PyTorch [out,in]
    weights to [in,out], zero-pad to (LANE, LANE), and stack into a single
    (n_layers, LANE, LANE) array; biases -> (n_layers, 1, LANE)."""
    ws, bs = [], []
    for (w, b) in params:
        wt = jnp.asarray(w, jnp.float32).T
        ws.append(jnp.pad(wt, ((0, LANE - wt.shape[0]), (0, LANE - wt.shape[1]))))
        bp = jnp.asarray(b, jnp.float32)[None, :]
        bs.append(jnp.pad(bp, ((0, 0), (0, LANE - bp.shape[1]))))
    return jnp.stack(ws), jnp.stack(bs)


@functools.partial(jax.jit, static_argnames=("out_features",))
def moon_model_forward(x, w_stack, b_stack, out_features):
    """x: [batch, in_features] f32. w_stack: [4,128,128], b_stack: [4,1,128]."""
    batch, in_features = x.shape
    n_layers = w_stack.shape[0]

    tm = _choose_tile(batch)
    batch_p = _round_up(batch, tm)
    x_p = jnp.pad(x, ((0, batch_p - batch), (0, 0)))   # row pad only

    kernel = functools.partial(_mlp_kernel,
                               in_features=in_features,
                               out_features=out_features)

    out_p = pl.pallas_call(
        kernel,
        out_shape=jax.ShapeDtypeStruct((batch_p, out_features), jnp.float32),
        grid=(batch_p // tm,),
        in_specs=[
            # Unpadded input columns; last dim == full array dim is allowed.
            pl.BlockSpec((tm, in_features), lambda i: (i, 0)),
            # Weights/biases: constant index_map -> resident in VMEM across steps.
            pl.BlockSpec((n_layers, LANE, LANE), lambda i: (0, 0, 0)),
            pl.BlockSpec((n_layers, 1, LANE), lambda i: (0, 0, 0)),
        ],
        out_specs=pl.BlockSpec((tm, out_features), lambda i: (i, 0)),
        compiler_params=pltpu.CompilerParams(
            dimension_semantics=("parallel",)),
    )(x_p, w_stack, b_stack)

    return out_p[:batch]


def init_moon_params(key, input_features, output_features, hidden_units=5):
    """Deterministic init matching PyTorch nn.Linear default (U[-1/sqrt(fan_in), ..])."""
    dims = [(input_features, hidden_units),
            (hidden_units, hidden_units),
            (hidden_units, hidden_units),
            (hidden_units, output_features)]
    params = []
    for (fan_in, fan_out) in dims:
        key, kw, kb = jax.random.split(key, 3)
        bound = 1.0 / (fan_in ** 0.5)
        w = jax.random.uniform(kw, (fan_out, fan_in), jnp.float32, -bound, bound)
        b = jax.random.uniform(kb, (fan_out,), jnp.float32, -bound, bound)
        params.append((w, b))
    return params


def reference_forward(x, params):
    h = x
    for idx, (w, b) in enumerate(params):
        h = h @ w.T + b
        if idx < len(params) - 1:
            h = jnp.maximum(h, 0.0)
    return h


if __name__ == "__main__":
    key = jax.random.PRNGKey(0)

    input_features, output_features, hidden_units = 2, 1, 5
    kx, kp = jax.random.split(key)
    params = init_moon_params(kp, input_features, output_features, hidden_units)

    # One-time weight prep (outside the per-call forward path).
    w_stack, b_stack = preprocess_params(params)

    # Case 1: batch that tiles evenly (grid of 2 parallel steps).
    batch = 64
    x = jax.random.normal(kx, (batch, input_features), jnp.float32)
    out = moon_model_forward(x, w_stack, b_stack, out_features=output_features)
    out = jax.block_until_ready(out)
    ref = reference_forward(x, params)
    assert out.shape == (batch, output_features), out.shape
    assert jnp.allclose(out, ref, atol=1e-5, rtol=1e-5), (out, ref)

    # Case 2: ragged batch (exercises row padding / slice-off path).
    batch2 = 10
    x2 = jax.random.normal(jax.random.PRNGKey(7), (batch2, input_features),
                           jnp.float32)
    out2 = moon_model_forward(x2, w_stack, b_stack, out_features=output_features)
    out2 = jax.block_until_ready(out2)
    ref2 = reference_forward(x2, params)
    assert out2.shape == (batch2, output_features), out2.shape
    assert jnp.allclose(out2, ref2, atol=1e-5, rtol=1e-5), (out2, ref2)

    print("KERNEL_OK")
</pallas_src>

<mosaic_0001>
module attributes {stable_mosaic.version = 11 : i64} {
  func.func @_mlp_kernel(%arg0: i32, %arg1: memref<32x2xf32, #tpu.memory_space<vmem>>, %arg2: memref<4x128x128xf32, #tpu.memory_space<vmem>>, %arg3: memref<4x1x128xf32, #tpu.memory_space<vmem>>, %arg4: memref<32x1xf32, #tpu.memory_space<vmem>>) attributes {dimension_semantics = [#tpu.dimension_semantics<parallel>], iteration_bounds = array<i64: 2>, scalar_prefetch = 0 : i64, scratch_operands = 0 : i64, tpu.core_type = #tpu.core_type<tc>, window_params = [{transform_indices = @transform_0, window_bounds = array<i64: 32, 2>}, {pipeline_mode = #tpu.pipeline_mode<synchronous>, transform_indices = @transform_1, window_bounds = array<i64: 4, 128, 128>}, {pipeline_mode = #tpu.pipeline_mode<synchronous>, transform_indices = @transform_2, window_bounds = array<i64: 4, 1, 128>}, {transform_indices = @transform_3, window_bounds = array<i64: 32, 1>}]} {
    %c0 = arith.constant 0 : index
    %c0_0 = arith.constant 0 : index
    %0 = vector.load %arg1[%c0, %c0_0] : memref<32x2xf32, #tpu.memory_space<vmem>>, vector<32x2xf32>
    %c0_1 = arith.constant 0 : index
    %c0_2 = arith.constant 0 : index
    %c0_3 = arith.constant 0 : index
    %1 = vector.load %arg2[%c0_1, %c0_2, %c0_3] : memref<4x128x128xf32, #tpu.memory_space<vmem>>, vector<1x128x128xf32>
    %2 = vector.shape_cast %1 : vector<1x128x128xf32> to vector<128x128xf32>
    %3 = vector.extract_strided_slice %0 {offsets = [0, 0], sizes = [32, 1], strides = [1, 1]} : vector<32x2xf32> to vector<32x1xf32>
    %4 = vector.extract_strided_slice %2 {offsets = [0, 0], sizes = [1, 128], strides = [1, 1]} : vector<128x128xf32> to vector<1x128xf32>
    %5 = vector.broadcast %3 : vector<32x1xf32> to vector<32x128xf32>
    %6 = vector.broadcast %4 : vector<1x128xf32> to vector<32x128xf32>
    %7 = arith.mulf %5, %6 : vector<32x128xf32>
    %8 = vector.extract_strided_slice %0 {offsets = [0, 1], sizes = [32, 1], strides = [1, 1]} : vector<32x2xf32> to vector<32x1xf32>
    %9 = vector.extract_strided_slice %2 {offsets = [1, 0], sizes = [1, 128], strides = [1, 1]} : vector<128x128xf32> to vector<1x128xf32>
    %10 = vector.broadcast %8 : vector<32x1xf32> to vector<32x128xf32>
    %11 = vector.broadcast %9 : vector<1x128xf32> to vector<32x128xf32>
    %12 = arith.mulf %10, %11 : vector<32x128xf32>
    %13 = arith.addf %7, %12 : vector<32x128xf32>
    %c0_4 = arith.constant 0 : index
    %c0_5 = arith.constant 0 : index
    %c0_6 = arith.constant 0 : index
    %14 = vector.load %arg3[%c0_4, %c0_5, %c0_6] : memref<4x1x128xf32, #tpu.memory_space<vmem>>, vector<1x1x128xf32>
    %15 = vector.shape_cast %14 : vector<1x1x128xf32> to vector<1x128xf32>
    %16 = vector.broadcast %15 : vector<1x128xf32> to vector<32x128xf32>
    %17 = arith.addf %13, %16 : vector<32x128xf32>
    %cst = arith.constant 0.000000e+00 : f32
    %18 = vector.broadcast %cst : f32 to vector<32x128xf32>
    %19 = arith.maximumf %17, %18 : vector<32x128xf32>
    %c1 = arith.constant 1 : index
    %c0_7 = arith.constant 0 : index
    %c0_8 = arith.constant 0 : index
    %20 = vector.load %arg2[%c1, %c0_7, %c0_8] : memref<4x128x128xf32, #tpu.memory_space<vmem>>, vector<1x128x128xf32>
    %21 = vector.shape_cast %20 : vector<1x128x128xf32> to vector<128x128xf32>
    %cst_9 = arith.constant dense<0.000000e+00> : vector<32x128xf32>
    %22 = tpu.matmul %19, %21, %cst_9 {dimension_numbers = #tpu.dot_dimension_numbers<[1], [0], [0], [1], [0, 0, 1, 1], [], []>} : vector<32x128xf32>, vector<128x128xf32>, vector<32x128xf32> -> vector<32x128xf32>
    %c1_10 = arith.constant 1 : index
    %c0_11 = arith.constant 0 : index
    %c0_12 = arith.constant 0 : index
    %23 = vector.load %arg3[%c1_10, %c0_11, %c0_12] : memref<4x1x128xf32, #tpu.memory_space<vmem>>, vector<1x1x128xf32>
    %24 = vector.shape_cast %23 : vector<1x1x128xf32> to vector<1x128xf32>
    %25 = vector.broadcast %24 : vector<1x128xf32> to vector<32x128xf32>
    %26 = arith.addf %22, %25 : vector<32x128xf32>
    %cst_13 = arith.constant 0.000000e+00 : f32
    %27 = vector.broadcast %cst_13 : f32 to vector<32x128xf32>
    %28 = arith.maximumf %26, %27 : vector<32x128xf32>
    %c2 = arith.constant 2 : index
    %c0_14 = arith.constant 0 : index
    %c0_15 = arith.constant 0 : index
    %29 = vector.load %arg2[%c2, %c0_14, %c0_15] : memref<4x128x128xf32, #tpu.memory_space<vmem>>, vector<1x128x128xf32>
    %30 = vector.shape_cast %29 : vector<1x128x128xf32> to vector<128x128xf32>
    %cst_16 = arith.constant dense<0.000000e+00> : vector<32x128xf32>
    %31 = tpu.matmul %28, %30, %cst_16 {dimension_numbers = #tpu.dot_dimension_numbers<[1], [0], [0], [1], [0, 0, 1, 1], [], []>} : vector<32x128xf32>, vector<128x128xf32>, vector<32x128xf32> -> vector<32x128xf32>
    %c2_17 = arith.constant 2 : index
    %c0_18 = arith.constant 0 : index
    %c0_19 = arith.constant 0 : index
    %32 = vector.load %arg3[%c2_17, %c0_18, %c0_19] : memref<4x1x128xf32, #tpu.memory_space<vmem>>, vector<1x1x128xf32>
    %33 = vector.shape_cast %32 : vector<1x1x128xf32> to vector<1x128xf32>
    %34 = vector.broadcast %33 : vector<1x128xf32> to vector<32x128xf32>
    %35 = arith.addf %31, %34 : vector<32x128xf32>
    %cst_20 = arith.constant 0.000000e+00 : f32
    %36 = vector.broadcast %cst_20 : f32 to vector<32x128xf32>
    %37 = arith.maximumf %35, %36 : vector<32x128xf32>
    %c3 = arith.constant 3 : index
    %c0_21 = arith.constant 0 : index
    %c0_22 = arith.constant 0 : index
    %38 = vector.load %arg2[%c3, %c0_21, %c0_22] : memref<4x128x128xf32, #tpu.memory_space<vmem>>, vector<1x128x128xf32>
    %39 = vector.shape_cast %38 : vector<1x128x128xf32> to vector<128x128xf32>
    %cst_23 = arith.constant dense<0.000000e+00> : vector<32x128xf32>
    %40 = tpu.matmul %37, %39, %cst_23 {dimension_numbers = #tpu.dot_dimension_numbers<[1], [0], [0], [1], [0, 0, 1, 1], [], []>} : vector<32x128xf32>, vector<128x128xf32>, vector<32x128xf32> -> vector<32x128xf32>
    %c3_24 = arith.constant 3 : index
    %c0_25 = arith.constant 0 : index
    %c0_26 = arith.constant 0 : index
    %41 = vector.load %arg3[%c3_24, %c0_25, %c0_26] : memref<4x1x128xf32, #tpu.memory_space<vmem>>, vector<1x1x128xf32>
    %42 = vector.shape_cast %41 : vector<1x1x128xf32> to vector<1x128xf32>
    %43 = vector.broadcast %42 : vector<1x128xf32> to vector<32x128xf32>
    %44 = arith.addf %40, %43 : vector<32x128xf32>
    %45 = vector.extract_strided_slice %44 {offsets = [0, 0], sizes = [32, 1], strides = [1, 1]} : vector<32x128xf32> to vector<32x1xf32>
    %c0_27 = arith.constant 0 : index
    %c0_28 = arith.constant 0 : index
    %46 = vector.load %arg4[%c0_27, %c0_28] : memref<32x1xf32, #tpu.memory_space<vmem>>, vector<32x1xf32>
    tpu.vector_store %arg4[%c0_27, %c0_28], %45 {strides = array<i32>} : memref<32x1xf32, #tpu.memory_space<vmem>>, vector<32x1xf32>,
    return
  }
  func.func @transform_0(%arg0: i32) -> (i32, i32) {
    %c0_i32 = arith.constant 0 : i32
    %c0_i32_0 = arith.constant 0 : i32
    return %arg0, %c0_i32 : i32, i32
  }
  func.func @transform_1(%arg0: i32) -> (i32, i32, i32) {
    %c0_i32 = arith.constant 0 : i32
    %c0_i32_0 = arith.constant 0 : i32
    %c0_i32_1 = arith.constant 0 : i32
    %c0_i32_2 = arith.constant 0 : i32
    return %c0_i32, %c0_i32_0, %c0_i32_1 : i32, i32, i32
  }
  func.func @transform_2(%arg0: i32) -> (i32, i32, i32) {
    %c0_i32 = arith.constant 0 : i32
    %c0_i32_0 = arith.constant 0 : i32
    %c0_i32_1 = arith.constant 0 : i32
    %c0_i32_2 = arith.constant 0 : i32
    return %c0_i32, %c0_i32_0, %c0_i32_1 : i32, i32, i32
  }
  func.func @transform_3(%arg0: i32) -> (i32, i32) {
    %c0_i32 = arith.constant 0 : i32
    %c0_i32_0 = arith.constant 0 : i32
    return %arg0, %c0_i32 : i32, i32
  }
}

</mosaic_0001>

<bundles_post_ra>
// kernel: moon_model_forward.1
= control target key start
LH: loop header
LB: loop body
LE: loop exit
PB: predicated region body
PF: predicated region fallthrough
CT: control target
= control target key end

     0   :  { %8 = vsyncpa [#allocation3], 0  ;;  %s993_s12 = smov 0   ;;  %s1050_s0 = inlined_call_operand.vmem [shape: f32[64,2], index: 0, kind: input, shape index: {}]   ;;  %s1051_s1 = inlined_call_operand.hbm [shape: f32[4,128,128], index: 1, kind: input, shape index: {}]   ;;  %s1052_s2 = inlined_call_operand.vmem [shape: f32[4,1,128], index: 2, kind: input, shape index: {}]   ;;  %s1053_s3 = inlined_call_operand.vmem [shape: f32[64,1], index: 3, kind: output, shape index: {}]  }
   0x1 LB: > { %s676_s13 = sadd.s32 4294967295, %s966_s12   ;;  %p678_p0 = scmp.ge.s32.totalorder %s966_s12, 1  ;;  %s966_s12 = sphi %s993_s12, %s14_s12  }
   0x2   : > { %p113_p1 = scmp.lt.s32.totalorder %s966_s12, 3  ;;  %s968_s14 = smov [#allocation2]  }
   0x3   : > { %s125_s15 = sshll.u32 %s968_s14, 4  ;;  %p1005_p3 = scmp.eq.s32.totalorder %s676_s13, 0  ;;  %s126_s15 = int_to_ptr.vmem [resolvable:$true] %s125_s15 }
   0x4   : > { %p1001_p2 = pnand %p678_p0, %p113_p1  ;;  %s941_s18 = scalar_lea.vmem %s126_s15, 8192 }
   0x5   : > { %p942_p7 = scmp.ne.s32.totalorder %s126_s15, %s941_s18  ;;  %p949_p10 = scmp.lt.s32.totalorder %s126_s15, %s126_s15 }
   0x6   : > { %p906_p4 = pneg %p1001_p2  ;;  %p950_p11 = scmp.lt.s32.totalorder %s941_s18, %s941_s18 }
   0x8   : > { %p907_p5 = pnand %p1005_p3, %p906_p4  ;;  %p951_p12 = por %p950_p11, %p949_p10 }
   0xa   : > { %p932_p6 = pneg %p907_p5 }
   0xc   : > { %p944_p8 = pnand %p942_p7, %p932_p6 }
   0xe   : > { %p945_p9 = pneg %p944_p8 }
  0x10   : > { %p952_p13 = pnand %p951_p12, %p945_p9 }
  0x12   : > { %955 = shalt.err (!%p952_p13)
}
  0x13   : > { %s969_s19 = smov 128   ;;  %s970_s20 = smov 8  }
  0x14   : > { %909 = dma.hbm_to_vmem [thread:$0]  (!%p907_p5), %s1051_s1, 8192, %s126_s15, [#allocation3], %s969_s19, %s969_s19, %s970_s20  }
  0x15   : > { %153 = sbr.rel (%p1001_p2) target bundleno = 778 (0x30a), region = 32 }
  0x1a   : > { %961 = dma.done.wait (%p1005_p3), [#allocation3], 8192  }
  0x1b   : > { %963 = vsyncadd (%p1005_p3), [#allocation3], 4294959104  ;;  %s683_s23 = sshll.u32 %s676_s13, 2  ;;  %v971_v0 = vmov 0   ;;  %v281_v3 = vld [vmem:[#allocation2 + $0xf8] sm:$0xff]  ;;  %v280_v4 = vld [vmem:[#allocation2 + $0xf0] sm:$0xff]  ;;  %v214_v34 = vlaneseq }
  0x1c   : > { %927 = vset.pattern.permute.xlu1 %v971_v0  ;;  %925 = vset.pattern.permute.xlu0 %v971_v0  ;;  %p178_p0 = scmp.lt.s32.totalorder %s683_s23, 7  ;;  %v972_v5 = vmov 1   ;;  %v279_v6 = vld [vmem:[#allocation2 + $0xe8] sm:$0xff]  ;;  %v278_v8 = vld [vmem:[#allocation2 + $0xe0] sm:$0xff]  ;;  %v277_v9 = vld [vmem:[#allocation2 + $0xd8] sm:$0xff]  ;;  %vm603_vm0 = vcmask 7168  }
  0x1d   : > { %756 = vmatprep.subr.mxu0 %v281_v3  ;;  %v276_v11 = vld [vmem:[#allocation2 + $0xd0] sm:$0xff]  ;;  %v275_v12 = vld [vmem:[#allocation2 + $0xc8] sm:$0xff]  ;;  %v274_v13 = vld [vmem:[#allocation2 + $0xc0] sm:$0xff]  ;;  %v215_v35 = vshrl.u32 %v214_v34, 7 }
  0x1e   : > { %s1057_s23 = smov (!%p178_p0, %s683_s23), 7  ;;  %757 = vmatpush3.msra.mxu0 %v281_v3  ;;  %v273_v14 = vld [vmem:[#allocation2 + $0xb8] sm:$0xff]  ;;  %v394_v16 = vld [vmem:[#allocation2 + $0x170] sm:$0xff]  ;;  %v393_v18 = vld [vmem:[#allocation2 + $0x168] sm:$0xff] }
  0x1f   : > { %s684_s24 = sshll.u32 %s1057_s23, 3  ;;  %758 = vmatprep.subr.mxu0 %v280_v4  ;;  %v395_v15 = vld [vmem:[#allocation2 + $0x178] sm:$0xff]  ;;  %v272_v17 = vld [vmem:[#allocation2 + $0xb0] sm:$0xff]  ;;  %v271_v19 = vld [vmem:[#allocation2 + $0xa8] sm:$0xff]  ;;  %v216_v36 = vsub.s32 0, %v215_v35  ;;  %v240_v37 = vsub.s32 1, %v215_v35 }
  0x20   : > { %s181_s27 = scalar_lea.vmem %s1050_s0, %s684_s24  ;;  %759 = vmatpush3.msra.mxu0 %v280_v4  ;;  %794 = vmatprep.subr.mxu1 %v395_v15  ;;  %v392_v20 = vld [vmem:[#allocation2 + $0x160] sm:$0xff]  ;;  %v391_v22 = vld [vmem:[#allocation2 + $0x158] sm:$0xff]  ;;  %v390_v24 = vld [vmem:[#allocation2 + $0x150] sm:$0xff]  ;;  %s187_s11 = scalar_lea.vmem %s1053_s3, %s684_s24 }
  0x21   : > { %v190_v1 = vld [vmem:[%s181_s27 + $0x8] sm:$0xff]  ;;  %v189_v2 = vld [vmem:[%s181_s27] sm:$0xff]  ;;  %v191_v7 = vld [vmem:[%s181_s27 + $0x10] sm:$0xff]  ;;  %760 = vmatprep.subr.mxu0 %v279_v6  ;;  %795 = vmatpush3.msra.mxu1 %v395_v15 }
  0x22   : > { %201 = vperm.xlu1 %927, %v190_v1   ;;  %196 = vperm.xlu0 %925, %v189_v2   ;;  %v192_v10 = vld [vmem:[%s181_s27 + $0x18] sm:$0xff]  ;;  %v270_v21 = vld [vmem:[#allocation2 + $0xa0] sm:$0xff]  ;;  %v268_v25 = vld [vmem:[#allocation2 + $0x90] sm:$0xff] }
  0x23   : > { %761 = vmatpush3.msra.mxu0 %v279_v6  ;;  %796 = vmatprep.subr.mxu1 %v394_v16  ;;  %v269_v23 = vld [vmem:[#allocation2 + $0x98] sm:$0xff]  ;;  %v389_v26 = vld [vmem:[#allocation2 + $0x148] sm:$0xff]  ;;  %v388_v28 = vld [vmem:[#allocation2 + $0x140] sm:$0xff] }
  0x24   : > { %762 = vmatprep.subr.mxu0 %v278_v8  ;;  %797 = vmatpush3.msra.mxu1 %v394_v16  ;;  %v267_v27 = vld [vmem:[#allocation2 + $0x88] sm:$0xff]  ;;  %v266_v29 = vld [vmem:[#allocation2 + $0x80] sm:$0xff]  ;;  %v387_v30 = vld [vmem:[#allocation2 + $0x138] sm:$0xff] }
  0x25   : > { %763 = vmatpush3.msra.mxu0 %v278_v8  ;;  %798 = vmatprep.subr.mxu1 %v393_v18  ;;  %v386_v31 = vld [vmem:[#allocation2 + $0x130] sm:$0xff]  ;;  %v385_v32 = vld [vmem:[#allocation2 + $0x128] sm:$0xff]  ;;  %v384_v33 = vld [vmem:[#allocation2 + $0x120] sm:$0xff] }
  0x26   : > { %928 = vset.pattern.permute.xlu1 %v972_v5  ;;  %926 = vset.pattern.permute.xlu0 %v972_v5  ;;  %v193_v38 = vld [vmem:[#allocation2] sm:$0xff]  ;;  %v383_v6 = vld [vmem:[#allocation2 + $0x118] sm:$0xff]  ;;  %v381_v8 = vld [vmem:[#allocation2 + $0x108] sm:$0xff] }
  0x27   : > { %227 = vperm.xlu1 %928, %v190_v1   ;;  %223 = vperm.xlu0 %926, %v189_v2   ;;  %v217_v41 = vrot.slane %v193_v38, %v216_v36  ;;  %v241_v42 = vrot.slane %v193_v38, %v240_v37  ;;  %v687_v49 = vld [vmem:[%s1052_s2] ss:$0 sm:$0xff]  ;;  %v504_v15 = vld [vmem:[#allocation2 + $0x1d0] sm:$0xff]  ;;  %v503_v16 = vld [vmem:[#allocation2 + $0x1c8] sm:$0xff] }
  0x28   : > { %764 = vmatprep.subr.mxu0 %v277_v9  ;;  %799 = vmatpush3.msra.mxu1 %v393_v18  ;;  %v501_v18 = vld [vmem:[#allocation2 + $0x1b8] sm:$0xff]  ;;  %v496_v36 = vld [vmem:[#allocation2 + $0x190] sm:$0xff]  ;;  %v495_v37 = vld [vmem:[#allocation2 + $0x188] sm:$0xff] }
  0x29   : > { %765 = vmatpush3.msra.mxu0 %v277_v9  ;;  %800 = vmatprep.subr.mxu1 %v392_v20  ;;  %v380_v9 = vld [vmem:[#allocation2 + $0x100] sm:$0xff]  ;;  %v497_v35 = vld [vmem:[#allocation2 + $0x198] sm:$0xff] }
  0x2a   : > { %766 = vmatprep.subr.mxu0 %v276_v11  ;;  %801 = vmatpush3.msra.mxu1 %v392_v20  ;;  %v499_v20 = vld [vmem:[#allocation2 + $0x1a8] sm:$0xff]  ;;  %v494_v38 = vld [vmem:[#allocation2 + $0x180] sm:$0xff] }
  0x2b   : > { %929 = vset.pattern.permute.xlu1 %v971_v0  ;;  %231 = vperm.xlu0 %926, %v191_v7  }
  0x2c   : > { %206 = vperm.xlu1 %929, %v191_v7   ;;  %767 = vmatpush3.msra.mxu0 %v276_v11  ;;  %v382_v7 = vld [vmem:[#allocation2 + $0x110] sm:$0xff] }
  0x2d   : > { %768 = vmatprep.subr.mxu0 %v275_v12  ;;  %802 = vmatprep.subr.mxu1 %v391_v22  ;;  %v508_v11 = vld [vmem:[#allocation2 + $0x1f0] sm:$0xff] }
  0x2e   : > { %769 = vmatpush3.msra.mxu0 %v275_v12  ;;  %803 = vmatpush3.msra.mxu1 %v391_v22  ;;  %v507_v12 = vld [vmem:[#allocation2 + $0x1e8] sm:$0xff]  ;;  %v689_v22 = vld [vmem:[%s1052_s2 + $0x1] ss:$0 sm:$0xff] }
  0x2f   : > { %235 = vperm.xlu0 %926, %v192_v10   ;;  %770 = vmatprep.subr.mxu0 %v274_v13 }
  0x30   : > { %211 = vperm.xlu1 %929, %v192_v10   ;;  %771 = vmatpush3.msra.mxu0 %v274_v13  ;;  %v509_v10 = vld [vmem:[#allocation2 + $0x1f8] sm:$0xff]  ;;  %v506_v13 = vld [vmem:[#allocation2 + $0x1e0] sm:$0xff] }
  0x31   : > { %772 = vmatprep.subr.mxu0 %v273_v14  ;;  %804 = vmatprep.subr.mxu1 %v390_v24 }
  0x32   : > { %773 = vmatpush3.msra.mxu0 %v273_v14  ;;  %805 = vmatpush3.msra.mxu1 %v390_v24  ;;  %v505_v14 = vld [vmem:[#allocation2 + $0x1d8] sm:$0xff] }
  0x33   : > { %774 = vmatprep.subr.mxu0 %v272_v17  ;;  %806 = vmatprep.subr.mxu1 %v389_v26 }
  0x34   : > { %775 = vmatpush3.msra.mxu0 %v272_v17  ;;  %807 = vmatpush3.msra.mxu1 %v389_v26  ;;  %v502_v17 = vld [vmem:[#allocation2 + $0x1c0] sm:$0xff] }
  0x35   : > { %776 = vmatprep.subr.mxu0 %v271_v19  ;;  %808 = vmatprep.subr.mxu1 %v388_v28 }
  0x36   : > { %777 = vmatpush3.msra.mxu0 %v271_v19  ;;  %809 = vmatpush3.msra.mxu1 %v388_v28  ;;  %v500_v19 = vld [vmem:[#allocation2 + $0x1b0] sm:$0xff] }
  0x37   : > { %778 = vmatprep.subr.mxu0 %v270_v21  ;;  %810 = vmatprep.subr.mxu1 %v387_v30 }
  0x38   : > { %779 = vmatpush3.msra.mxu0 %v270_v21  ;;  %811 = vmatpush3.msra.mxu1 %v387_v30  ;;  %v498_v21 = vld [vmem:[#allocation2 + $0x1a0] sm:$0xff] }
  0x39   : > { %780 = vmatprep.subr.mxu0 %v269_v23  ;;  %812 = vmatprep.subr.mxu1 %v386_v31 }
  0x3a   : > { %781 = vmatpush3.msra.mxu0 %v269_v23  ;;  %813 = vmatpush3.msra.mxu1 %v386_v31 }
  0x3b   : > { %782 = vmatprep.subr.mxu0 %v268_v25  ;;  %814 = vmatprep.subr.mxu1 %v385_v32 }
  0x3c   : > { %783 = vmatpush3.msra.mxu0 %v268_v25  ;;  %815 = vmatpush3.msra.mxu1 %v385_v32 }
  0x3d   : > { %784 = vmatprep.subr.mxu0 %v267_v27  ;;  %816 = vmatprep.subr.mxu1 %v384_v33 }
  0x3e   : > { %785 = vmatpush3.msra.mxu0 %v267_v27  ;;  %817 = vmatpush3.msra.mxu1 %v384_v33 }
  0x3f   : > { %786 = vmatprep.subr.mxu0 %v266_v29  ;;  %818 = vmatprep.subr.mxu1 %v383_v6 }
  0x40   : > { %787 = vmatpush3.msra.mxu0 %v266_v29  ;;  %819 = vmatpush3.msra.mxu1 %v383_v6 }
  0x41   : > { %820 = vmatprep.subr.mxu1 %v382_v7  ;;  %832 = vmatprep.subr.mxu0 %v509_v10 }
  0x42   : > { %821 = vmatpush3.msra.mxu1 %v382_v7 }
  0x43   : > { %822 = vmatprep.subr.mxu1 %v381_v8 }
  0x44   : > { %823 = vmatpush3.msra.mxu1 %v381_v8 }
  0x45   : > { %824 = vmatprep.subr.mxu1 %v380_v9 }
  0x46   : > { %825 = vmatpush3.msra.mxu1 %v380_v9 }
  0x47   : > { %870 = vmatprep.subr.mxu1 %v509_v10 }
  0x9d   : > { %v202_v39 = vpop.permute.xlu1 %201  ;;  %v197_v40 = vpop.permute.xlu0 %196 }
  0x9e   : > { %v219_v45 = vmul.f32 %v217_v41, %v202_v39  ;;  %v218_v46 = vmul.f32 %v217_v41, %v197_v40  ;;  %v691_v39 = vld [vmem:[%s1052_s2 + $0x2] ss:$0 sm:$0xff] }
  0xa2   : > { %v228_v43 = vpop.permute.xlu1 %227  ;;  %v224_v44 = vpop.permute.xlu0 %223 }
  0xa3   : > { %v243_v47 = vmul.f32 %v241_v42, %v228_v43  ;;  %v242_v48 = vmul.f32 %v241_v42, %v224_v44 }
  0xa5   : > { %v247_v50 = vadd.f32 %v243_v47, %v219_v45  ;;  %v246_v51 = vadd.f32 %v242_v48, %v218_v46 }
  0xa6   : > { %v232_v52 = vpop.permute.xlu0 %231 }
  0xa7   : > { %v244_v53 = vmul.f32 %v241_v42, %v232_v52  ;;  %v207_v54 = vpop.permute.xlu1 %206  ;;  %v257_v55 = vadd.f32 %v687_v49, %v246_v51  ;;  %v258_v56 = vadd.f32 %v687_v49, %v247_v50 }
  0xa8   : > { %v220_v57 = vmul.f32 %v217_v41, %v207_v54 }
  0xa9   : > { %v261_v58 = vmax.f32 %v257_v55, 0.0  ;;  %v262_v59 = vmax.f32 %v258_v56, 0.0 }
  0xaa   : > { %v248_v60 = vadd.f32 %v244_v53, %v220_v57  ;;  %v236_v61 = vpop.permute.xlu0 %235  ;;  %v693_v53 = vld [vmem:[%s1052_s2 + $0x3] ss:$0 sm:$0xff] }
  0xab   : > { %v245_v62 = vmul.f32 %v241_v42, %v236_v61  ;;  %v212_v63 = vpop.permute.xlu1 %211  ;;  %788 = vmatprep.mubr.f32.mxu0 %v261_v58 }
  0xac   : > { %v221_v0 = vmul.f32 %v217_v41, %v212_v63  ;;  %789 = vmatmul.mubr.f32.vlgmr.msra.gmra.mxu0 %v262_v59  ;;  %v259_v1 = vadd.f32 %v687_v49, %v248_v60 }
  0xad   : > { %833 = vmatpush3.msra.mxu0 %v509_v10 }
  0xae   : > { %v249_v2 = vadd.f32 %v245_v62, %v221_v0  ;;  %v263_v3 = vmax.f32 %v259_v1, 0.0  ;;  %834 = vmatprep.subr.mxu0 %v508_v11 }
  0xaf   : > { %835 = vmatpush3.msra.mxu0 %v508_v11 }
  0xb0   : > { %791 = vmatprep.mubr.f32.mxu0 %v263_v3  ;;  %v260_v4 = vadd.f32 %v687_v49, %v249_v2  ;;  %836 = vmatprep.subr.mxu0 %v507_v12 }
  0xb1   : > { %837 = vmatpush3.msra.mxu0 %v507_v12 }
  0xb2   : > { %v264_v5 = vmax.f32 %v260_v4, 0.0  ;;  %838 = vmatprep.subr.mxu0 %v506_v13 }
  0xb3   : > { %839 = vmatpush3.msra.mxu0 %v506_v13 }
  0xb4   : > { %792 = vmatmul.mubr.f32.gmra.mxu0 %v264_v5  ;;  %840 = vmatprep.subr.mxu0 %v505_v14 }
  0xb5   : > { %841 = vmatpush3.msra.mxu0 %v505_v14 }
  0xb6   : > { %842 = vmatprep.subr.mxu0 %v504_v15 }
  0xb7   : > { %843 = vmatpush3.msra.mxu0 %v504_v15 }
  0xb8   : > { %844 = vmatprep.subr.mxu0 %v503_v16 }
  0xb9   : > { %845 = vmatpush3.msra.mxu0 %v503_v16 }
  0xba   : > { %846 = vmatprep.subr.mxu0 %v502_v17 }
  0xbb   : > { %847 = vmatpush3.msra.mxu0 %v502_v17 }
  0xbc   : > { %848 = vmatprep.subr.mxu0 %v501_v18 }
  0xbd   : > { %849 = vmatpush3.msra.mxu0 %v501_v18 }
  0xbe   : > { %850 = vmatprep.subr.mxu0 %v500_v19 }
  0xbf   : > { %851 = vmatpush3.msra.mxu0 %v500_v19 }
  0xc0   : > { %852 = vmatprep.subr.mxu0 %v499_v20 }
  0xc1   : > { %853 = vmatpush3.msra.mxu0 %v499_v20 }
  0xc2   : > { %854 = vmatprep.subr.mxu0 %v498_v21 }
  0xc3   : > { %855 = vmatpush3.msra.mxu0 %v498_v21 }
  0xc4   : > { %856 = vmatprep.subr.mxu0 %v497_v35 }
  0xc5   : > { %857 = vmatpush3.msra.mxu0 %v497_v35 }
  0xc6   : > { %858 = vmatprep.subr.mxu0 %v496_v36 }
  0xc7   : > { %859 = vmatpush3.msra.mxu0 %v496_v36 }
  0xc8   : > { %860 = vmatprep.subr.mxu0 %v495_v37 }
  0xc9   : > { %861 = vmatpush3.msra.mxu0 %v495_v37 }
  0xca   : > { %862 = vmatprep.subr.mxu0 %v494_v38 }
  0xcb   : > { %863 = vmatpush3.msra.mxu0 %v494_v38 }
 0x16c   : > { %v790_v23 = vpop.f32.mrf.mxu0 }
 0x16d   : > { %v362_v24 = vadd.f32 %v790_v23, %v689_v22 }
 0x16e   : > { %v356_v25 = vpop.f32.mrf.mxu0 }
 0x16f   : > { %v357_v26 = vadd.f32 %v689_v22, %v356_v25  ;;  %v376_v28 = vmax.f32 %v362_v24, 0.0 }
 0x171   : > { %v375_v27 = vmax.f32 %v357_v26, 0.0 }
 0x173   : > { %826 = vmatprep.mubr.f32.mxu1 %v375_v27 }
 0x174   : > { %v793_v29 = vpop.f32.mrf.mxu0  ;;  %827 = vmatmul.mubr.f32.vlgmr.msra.gmra.mxu1 %v376_v28 }
 0x175   : > { %886 = vmatpush3.msra.mxu1 %v509_v10  ;;  %v372_v30 = vadd.f32 %v793_v29, %v689_v22 }
 0x176   : > { %v366_v31 = vpop.f32.mrf.mxu0  ;;  %871 = vmatprep.subr.mxu1 %v508_v11 }
 0x177   : > { %v367_v32 = vadd.f32 %v689_v22, %v366_v31  ;;  %887 = vmatpush3.msra.mxu1 %v508_v11  ;;  %v378_v34 = vmax.f32 %v372_v30, 0.0 }
 0x178   : > { %872 = vmatprep.subr.mxu1 %v507_v12 }
 0x179   : > { %v377_v33 = vmax.f32 %v367_v32, 0.0  ;;  %888 = vmatpush3.msra.mxu1 %v507_v12 }
 0x17a   : > { %873 = vmatprep.subr.mxu1 %v506_v13 }
 0x17b   : > { %829 = vmatprep.mubr.f32.mxu1 %v377_v33  ;;  %889 = vmatpush3.msra.mxu1 %v506_v13 }
 0x17c   : > { %830 = vmatmul.mubr.f32.gmra.mxu1 %v378_v34  ;;  %874 = vmatprep.subr.mxu1 %v505_v14 }
 0x17d   : > { %890 = vmatpush3.msra.mxu1 %v505_v14 }
 0x17e   : > { %875 = vmatprep.subr.mxu1 %v504_v15 }
 0x17f   : > { %891 = vmatpush3.msra.mxu1 %v504_v15 }
 0x180   : > { %876 = vmatprep.subr.mxu1 %v503_v16 }
 0x181   : > { %892 = vmatpush3.msra.mxu1 %v503_v16 }
 0x182   : > { %877 = vmatprep.subr.mxu1 %v502_v17 }
 0x183   : > { %893 = vmatpush3.msra.mxu1 %v502_v17 }
 0x184   : > { %878 = vmatprep.subr.mxu1 %v501_v18 }
 0x185   : > { %894 = vmatpush3.msra.mxu1 %v501_v18 }
 0x186   : > { %879 = vmatprep.subr.mxu1 %v500_v19 }
 0x187   : > { %895 = vmatpush3.msra.mxu1 %v500_v19 }
 0x188   : > { %880 = vmatprep.subr.mxu1 %v499_v20 }
 0x189   : > { %896 = vmatpush3.msra.mxu1 %v499_v20 }
 0x18a   : > { %881 = vmatprep.subr.mxu1 %v498_v21 }
 0x18b   : > { %897 = vmatpush3.msra.mxu1 %v498_v21 }
 0x18c   : > { %882 = vmatprep.subr.mxu1 %v497_v35 }
 0x18d   : > { %898 = vmatpush3.msra.mxu1 %v497_v35 }
 0x18e   : > { %883 = vmatprep.subr.mxu1 %v496_v36 }
 0x18f   : > { %899 = vmatpush3.msra.mxu1 %v496_v36 }
 0x190   : > { %884 = vmatprep.subr.mxu1 %v495_v37 }
 0x191   : > { %900 = vmatpush3.msra.mxu1 %v495_v37 }
 0x192   : > { %885 = vmatprep.subr.mxu1 %v494_v38 }
 0x193   : > { %901 = vmatpush3.msra.mxu1 %v494_v38 }
 0x234   : > { %v828_v40 = vpop.f32.mrf.mxu1 }
 0x235   : > { %v476_v41 = vadd.f32 %v828_v40, %v691_v39 }
 0x236   : > { %v470_v42 = vpop.f32.mrf.mxu1 }
 0x237   : > { %v471_v43 = vadd.f32 %v691_v39, %v470_v42  ;;  %v490_v45 = vmax.f32 %v476_v41, 0.0 }
 0x239   : > { %v489_v44 = vmax.f32 %v471_v43, 0.0 }
 0x23b   : > { %864 = vmatprep.mubr.f32.mxu0 %v489_v44 }
 0x23c   : > { %v831_v46 = vpop.f32.mrf.mxu1  ;;  %865 = vmatmul.mubr.f32.vlgmr.msra.gmra.mxu0 %v490_v45 }
 0x23d   : > { %v486_v47 = vadd.f32 %v831_v46, %v691_v39 }
 0x23e   : > { %v480_v48 = vpop.f32.mrf.mxu1 }
 0x23f   : > { %v481_v49 = vadd.f32 %v691_v39, %v480_v48  ;;  %v492_v51 = vmax.f32 %v486_v47, 0.0 }
 0x241   : > { %v491_v50 = vmax.f32 %v481_v49, 0.0 }
 0x243   : > { %867 = vmatprep.mubr.f32.mxu1 %v491_v50 }
 0x244   : > { %868 = vmatmul.mubr.f32.vlgmr.msra.gmra.mxu1 %v492_v51 }
 0x2fc   : > { %v866_v52 = vpop.f32.mrf.mxu0 }
 0x2fd   : > { %v590_v56 = vadd.f32 %v866_v52, %v693_v53 }
 0x2fe   : > { %v584_v54 = vpop.f32.mrf.mxu0 }
 0x2ff   : > { %v585_v55 = vadd.f32 %v693_v53, %v584_v54  ;;  %605 = vst.msk [vmem:[%s187_s11 + $0x8] sm:$0xff] %vm603_vm0, %v590_v56 }
 0x301   : > { %604 = vst.msk [vmem:[%s187_s11] sm:$0xff] %vm603_vm0, %v585_v55 }
 0x304   : > { %v869_v57 = vpop.f32.mrf.mxu1 }
 0x305   : > { %v600_v60 = vadd.f32 %v869_v57, %v693_v53 }
 0x306   : > { %v594_v58 = vpop.f32.mrf.mxu1 }
 0x307   : > { %v595_v59 = vadd.f32 %v693_v53, %v594_v58  ;;  %607 = vst.msk [vmem:[%s187_s11 + $0x18] sm:$0xff] %vm603_vm0, %v600_v60 }
 0x309   : > { %606 = vst.msk [vmem:[%s187_s11 + $0x10] sm:$0xff] %vm603_vm0, %v595_v59 }
 0x30a PF: > { %s14_s12 = sadd.s32 1, %s966_s12  }
 0x30b   : > { %p11_p1 = scmp.ge.s32.totalorder %s14_s12, 4  }
 0x30d   :  { %13 = sbr.rel (!%p11_p1) target bundleno = 1 (0x1), region = 73 }
 0x312   :  { %630 = vsyncpa [#allocation3], 1 }
 0x313   :  { %632 = vsyncpa [#allocation3 + $0x1], 1 }

</bundles_post_ra>
